<compile_context>
chip_gen: v5e
topology: v5e:2x2
jax: 0.10.0
libtpu: 0.0.40
codegen_flags: <defaults>
</compile_context>

<pallas_src>
import functools

import jax
import jax.numpy as jnp
from jax.experimental import pallas as pl
from jax.experimental.pallas import tpu as pltpu

INPUT_SIZE = 28 * 28          # 784
NUM_CLASSES = 10
C_PAD = 128                   # lane-dense padded class dim
EMBEDDING_SIZE = 16           # exercises the embedding branch of forward()
TB_DEFAULT = 1024             # batch tile (safe on v5e/v6e/v7x default VMEM)


def _round_up(n, m):
    return ((n + m - 1) // m) * m


def _linear_emb_kernel(x_ref, e_ref, wx_ref, we_ref, b_ref, o_ref):
    # x_ref: (TB, 784) bf16    e_ref: (TB, E) bf16
    # wx_ref: (784, 128) bf16  we_ref: (E, 128) bf16
    # b_ref: (1, 128) f32      o_ref: (TB, 128) f32
    acc = jnp.dot(x_ref[...], wx_ref[...], preferred_element_type=jnp.float32)
    acc += jnp.dot(e_ref[...], we_ref[...], preferred_element_type=jnp.float32)
    o_ref[...] = (acc + b_ref[...]).astype(o_ref.dtype)


def _linear_kernel(x_ref, wx_ref, b_ref, o_ref):
    acc = jnp.dot(x_ref[...], wx_ref[...], preferred_element_type=jnp.float32)
    o_ref[...] = (acc + b_ref[...]).astype(o_ref.dtype)


@functools.partial(jax.jit, static_argnames=("tb",))
def mnist_forward(xb, w, b, emb=None, *, tb=TB_DEFAULT):
    """Equivalent of MnistModel.forward.

    xb : (B, 1, 28, 28) float32 (NCHW) -- or anything reshapeable to (B, 784)
    w  : (784 [+E], 10) float32        -- nn.Linear weight, transposed
    b  : (10,) float32
    emb: optional (B, E) float32
    """
    x = xb.reshape(-1, INPUT_SIZE)
    B = x.shape[0]
    D_total, C = w.shape
    assert C == NUM_CLASSES
    E = D_total - INPUT_SIZE
    use_emb = emb is not None and E > 0
    if use_emb:
        assert emb.shape == (B, E)

    # Batch tiling: pad B up to a multiple of the tile. Padded rows are zero
    # and get sliced off after the kernel.
    Bp = _round_up(B, 16)                       # bf16 sublane packing
    TB = min(tb, Bp)
    Bp = _round_up(Bp, TB)
    grid = (Bp // TB,)

    x_p = jnp.zeros((Bp, INPUT_SIZE), jnp.bfloat16).at[:B].set(
        x.astype(jnp.bfloat16))

    # Lane-dense class padding 10 -> 128; split W into x / emb parts.
    w_x = jnp.zeros((INPUT_SIZE, C_PAD), jnp.bfloat16).at[:, :C].set(
        w[:INPUT_SIZE].astype(jnp.bfloat16))
    b_p = jnp.zeros((1, C_PAD), jnp.float32).at[0, :C].set(
        b.astype(jnp.float32))

    x_spec = pl.BlockSpec((TB, INPUT_SIZE), lambda i: (i, 0))
    wx_spec = pl.BlockSpec((INPUT_SIZE, C_PAD), lambda i: (0, 0))   # resident
    b_spec = pl.BlockSpec((1, C_PAD), lambda i: (0, 0))             # resident
    out_spec = pl.BlockSpec((TB, C_PAD), lambda i: (i, 0))
    out_shape = jax.ShapeDtypeStruct((Bp, C_PAD), jnp.float32)
    cparams = pltpu.CompilerParams(dimension_semantics=("parallel",))

    if use_emb:
        e_p = jnp.zeros((Bp, E), jnp.bfloat16).at[:B].set(
            emb.astype(jnp.bfloat16))
        w_e = jnp.zeros((E, C_PAD), jnp.bfloat16).at[:, :C].set(
            w[INPUT_SIZE:].astype(jnp.bfloat16))
        e_spec = pl.BlockSpec((TB, E), lambda i: (i, 0))
        we_spec = pl.BlockSpec((E, C_PAD), lambda i: (0, 0))        # resident
        out = pl.pallas_call(
            _linear_emb_kernel,
            out_shape=out_shape,
            grid=grid,
            in_specs=[x_spec, e_spec, wx_spec, we_spec, b_spec],
            out_specs=out_spec,
            compiler_params=cparams,
        )(x_p, e_p, w_x, w_e, b_p)
    else:
        out = pl.pallas_call(
            _linear_kernel,
            out_shape=out_shape,
            grid=grid,
            in_specs=[x_spec, wx_spec, b_spec],
            out_specs=out_spec,
            compiler_params=cparams,
        )(x_p, w_x, b_p)

    return out[:B, :NUM_CLASSES]


def init_params(key, in_features, out_features):
    # Deterministic init mimicking torch nn.Linear (uniform +/- 1/sqrt(fan_in)).
    kw, kb = jax.random.split(key)
    bound = 1.0 / jnp.sqrt(jnp.float32(in_features))
    w = jax.random.uniform(kw, (in_features, out_features), jnp.float32,
                           minval=-bound, maxval=bound)
    b = jax.random.uniform(kb, (out_features,), jnp.float32,
                           minval=-bound, maxval=bound)
    return w, b


def _reference(xb, w, b, emb=None):
    # Pure-JAX reference of the same forward, using the same bf16-quantized
    # inputs the kernel sees (accumulation in f32).
    x = xb.reshape(-1, INPUT_SIZE).astype(jnp.bfloat16).astype(jnp.float32)
    if emb is not None:
        e = emb.astype(jnp.bfloat16).astype(jnp.float32)
        x = jnp.concatenate([x, e], axis=1)
    w32 = w.astype(jnp.bfloat16).astype(jnp.float32)
    return jnp.dot(x, w32, precision=jax.lax.Precision.HIGHEST) + b


if __name__ == "__main__":
    key = jax.random.PRNGKey(0)
    k_x, k_emb, k_p1, k_p2, k_x3 = jax.random.split(key, 5)

    batch = 2
    x = jax.random.normal(k_x, (batch, 1, 28, 28), jnp.float32)       # NCHW
    emb = jax.random.normal(k_emb, (batch, EMBEDDING_SIZE), jnp.float32)

    # Path 1: with embedding (embedding_size > 0 in the torch module).
    w1, b1 = init_params(k_p1, INPUT_SIZE + EMBEDDING_SIZE, NUM_CLASSES)
    out1 = jax.block_until_ready(mnist_forward(x, w1, b1, emb))
    ref1 = _reference(x, w1, b1, emb)
    assert out1.shape == (batch, NUM_CLASSES)
    assert jnp.allclose(out1, ref1, atol=1e-2, rtol=1e-2), (
        float(jnp.max(jnp.abs(out1 - ref1))))

    # Path 2: no embedding (embedding_size == 0 in the torch module).
    w2, b2 = init_params(k_p2, INPUT_SIZE, NUM_CLASSES)
    out2 = jax.block_until_ready(mnist_forward(x, w2, b2))
    ref2 = _reference(x, w2, b2)
    assert out2.shape == (batch, NUM_CLASSES)
    assert jnp.allclose(out2, ref2, atol=1e-2, rtol=1e-2), (
        float(jnp.max(jnp.abs(out2 - ref2))))

    # Path 3: multi-tile grid + ragged tail (exercises the pipelined batch
    # tiling and the pad/slice path) with a small tile so it stays cheap.
    batch3 = 300
    x3 = jax.random.normal(k_x3, (batch3, 1, 28, 28), jnp.float32)
    out3 = jax.block_until_ready(mnist_forward(x3, w2, b2, tb=128))
    ref3 = _reference(x3, w2, b2)
    assert out3.shape == (batch3, NUM_CLASSES)
    assert jnp.allclose(out3, ref3, atol=1e-2, rtol=1e-2), (
        float(jnp.max(jnp.abs(out3 - ref3))))

    print("KERNEL_OK")
</pallas_src>

<mosaic_0001>
module attributes {stable_mosaic.version = 11 : i64} {
  func.func @_linear_emb_kernel(%arg0: i32, %arg1: memref<16x784xbf16, #tpu.memory_space<vmem>>, %arg2: memref<16x16xbf16, #tpu.memory_space<vmem>>, %arg3: memref<784x128xbf16, #tpu.memory_space<vmem>>, %arg4: memref<16x128xbf16, #tpu.memory_space<vmem>>, %arg5: memref<1x128xf32, #tpu.memory_space<vmem>>, %arg6: memref<16x128xf32, #tpu.memory_space<vmem>>) attributes {dimension_semantics = [#tpu.dimension_semantics<parallel>], iteration_bounds = array<i64: 1>, scalar_prefetch = 0 : i64, scratch_operands = 0 : i64, tpu.core_type = #tpu.core_type<tc>, window_params = [{transform_indices = @transform_0, window_bounds = array<i64: 16, 784>}, {transform_indices = @transform_1, window_bounds = array<i64: 16, 16>}, {pipeline_mode = #tpu.pipeline_mode<synchronous>, transform_indices = @transform_2, window_bounds = array<i64: 784, 128>}, {pipeline_mode = #tpu.pipeline_mode<synchronous>, transform_indices = @transform_3, window_bounds = array<i64: 16, 128>}, {pipeline_mode = #tpu.pipeline_mode<synchronous>, transform_indices = @transform_4, window_bounds = array<i64: 1, 128>}, {transform_indices = @transform_5, window_bounds = array<i64: 16, 128>}]} {
    %c0 = arith.constant 0 : index
    %c0_0 = arith.constant 0 : index
    %0 = vector.load %arg1[%c0, %c0_0] : memref<16x784xbf16, #tpu.memory_space<vmem>>, vector<16x784xbf16>
    %c0_1 = arith.constant 0 : index
    %c0_2 = arith.constant 0 : index
    %1 = vector.load %arg3[%c0_1, %c0_2] : memref<784x128xbf16, #tpu.memory_space<vmem>>, vector<784x128xbf16>
    %cst = arith.constant dense<0.000000e+00> : vector<16x128xf32>
    %2 = tpu.matmul %0, %1, %cst {dimension_numbers = #tpu.dot_dimension_numbers<[1], [0], [0], [1], [0, 0, 1, 1], [], []>} : vector<16x784xbf16>, vector<784x128xbf16>, vector<16x128xf32> -> vector<16x128xf32>
    %c0_3 = arith.constant 0 : index
    %c0_4 = arith.constant 0 : index
    %3 = vector.load %arg2[%c0_3, %c0_4] : memref<16x16xbf16, #tpu.memory_space<vmem>>, vector<16x16xbf16>
    %c0_5 = arith.constant 0 : index
    %c0_6 = arith.constant 0 : index
    %4 = vector.load %arg4[%c0_5, %c0_6] : memref<16x128xbf16, #tpu.memory_space<vmem>>, vector<16x128xbf16>
    %cst_7 = arith.constant dense<0.000000e+00> : vector<16x128xf32>
    %5 = tpu.matmul %3, %4, %cst_7 {dimension_numbers = #tpu.dot_dimension_numbers<[1], [0], [0], [1], [0, 0, 1, 1], [], []>} : vector<16x16xbf16>, vector<16x128xbf16>, vector<16x128xf32> -> vector<16x128xf32>
    %6 = arith.addf %2, %5 : vector<16x128xf32>
    %c0_8 = arith.constant 0 : index
    %c0_9 = arith.constant 0 : index
    %7 = vector.load %arg5[%c0_8, %c0_9] : memref<1x128xf32, #tpu.memory_space<vmem>>, vector<1x128xf32>
    %8 = vector.broadcast %7 : vector<1x128xf32> to vector<16x128xf32>
    %9 = arith.addf %6, %8 : vector<16x128xf32>
    %c0_10 = arith.constant 0 : index
    %c0_11 = arith.constant 0 : index
    %10 = vector.load %arg6[%c0_10, %c0_11] : memref<16x128xf32, #tpu.memory_space<vmem>>, vector<16x128xf32>
    tpu.vector_store %arg6[%c0_10, %c0_11], %9 {strides = array<i32>} : memref<16x128xf32, #tpu.memory_space<vmem>>, vector<16x128xf32>,
    return
  }
  func.func @transform_0(%arg0: i32) -> (i32, i32) {
    %c0_i32 = arith.constant 0 : i32
    %c0_i32_0 = arith.constant 0 : i32
    return %arg0, %c0_i32 : i32, i32
  }
  func.func @transform_1(%arg0: i32) -> (i32, i32) {
    %c0_i32 = arith.constant 0 : i32
    %c0_i32_0 = arith.constant 0 : i32
    return %arg0, %c0_i32 : i32, i32
  }
  func.func @transform_2(%arg0: i32) -> (i32, i32) {
    %c0_i32 = arith.constant 0 : i32
    %c0_i32_0 = arith.constant 0 : i32
    %c0_i32_1 = arith.constant 0 : i32
    return %c0_i32, %c0_i32_0 : i32, i32
  }
  func.func @transform_3(%arg0: i32) -> (i32, i32) {
    %c0_i32 = arith.constant 0 : i32
    %c0_i32_0 = arith.constant 0 : i32
    %c0_i32_1 = arith.constant 0 : i32
    return %c0_i32, %c0_i32_0 : i32, i32
  }
  func.func @transform_4(%arg0: i32) -> (i32, i32) {
    %c0_i32 = arith.constant 0 : i32
    %c0_i32_0 = arith.constant 0 : i32
    %c0_i32_1 = arith.constant 0 : i32
    return %c0_i32, %c0_i32_0 : i32, i32
  }
  func.func @transform_5(%arg0: i32) -> (i32, i32) {
    %c0_i32 = arith.constant 0 : i32
    %c0_i32_0 = arith.constant 0 : i32
    return %arg0, %c0_i32 : i32, i32
  }
}

</mosaic_0001>

<bundles_post_ra>
// kernel: mnist_forward.1
= control target key start
LH: loop header
LB: loop body
LE: loop exit
PB: predicated region body
PF: predicated region fallthrough
CT: control target
= control target key end

     0   :  { %vm142_vm0 = vcmask 130048   ;;  %s1131_s2 = inlined_call_operand.vmem [shape: bf16[784,128], index: 2, kind: input, shape index: {}]   ;;  %s1132_s3 = inlined_call_operand.vmem [shape: bf16[16,128], index: 3, kind: input, shape index: {}]   ;;  %s1133_s1 = inlined_call_operand.vmem [shape: bf16[16,16], index: 1, kind: input, shape index: {}]   ;;  %s1134_s0 = inlined_call_operand.vmem [shape: bf16[16,784], index: 0, kind: input, shape index: {}]   ;;  %s1135_s4 = inlined_call_operand.vmem [shape: f32[1,128], index: 4, kind: input, shape index: {}]   ;;  %s1136_s5 = inlined_call_operand.vmem [shape: f32[16,128], index: 5, kind: output, shape index: {}]  }
   0x1   :  { %v850_v0 = vld [vmem:[%s1131_s2 + $0x38] sm:$0xff]  ;;  %v849_v3 = vld [vmem:[%s1131_s2 + $0x30] sm:$0xff]  ;;  %v893_v5 = vld [vmem:[%s1132_s3] sm:$0xff] }
   0x2   :  { %v858_v1 = vld [vmem:[%s1131_s2 + $0x78] sm:$0xff]  ;;  %492 = vmatpush.bf16.msra.mxu1 %v850_v0  ;;  %v857_v4 = vld [vmem:[%s1131_s2 + $0x70] sm:$0xff]  ;;  %153 = vmatpush.bf16.msra.mxu0 %v893_v5  ;;  %v848_v8 = vld [vmem:[%s1131_s2 + $0x28] sm:$0xff] }
   0x3   :  { %v866_v2 = vld [vmem:[%s1131_s2 + $0xb8] sm:$0xff]  ;;  %506 = vmatpush.bf16.msra.mxu2 %v858_v1  ;;  %v865_v6 = vld [vmem:[%s1131_s2 + $0xb0] sm:$0xff]  ;;  %v856_v9 = vld [vmem:[%s1131_s2 + $0x68] sm:$0xff] }
   0x4   :  { %520 = vmatpush.bf16.msra.mxu3 %v866_v2  ;;  %v874_v7 = vld [vmem:[%s1131_s2 + $0xf8] sm:$0xff]  ;;  %v864_v10 = vld [vmem:[%s1131_s2 + $0xa8] sm:$0xff]  ;;  %v873_v11 = vld [vmem:[%s1131_s2 + $0xf0] sm:$0xff] }
   0x5   :  { %v892_v12 = vld [vmem:[%s1133_s1] sm:$0xff]  ;;  %v872_v16 = vld [vmem:[%s1131_s2 + $0xe8] sm:$0xff]  ;;  %v846_v17 = vld [vmem:[%s1131_s2 + $0x18] sm:$0xff] }
   0x6   :  { %493 = vmatpush.bf16.msra.mxu1 %v849_v3  ;;  %534 = vmatpush.bf16.msrb.mxu0 %v874_v7  ;;  %v847_v13 = vld [vmem:[%s1131_s2 + $0x20] sm:$0xff]  ;;  %v854_v18 = vld [vmem:[%s1131_s2 + $0x58] sm:$0xff]  ;;  %v845_v21 = vld [vmem:[%s1131_s2 + $0x10] sm:$0xff] }
   0x7   :  { %507 = vmatpush.bf16.msra.mxu2 %v857_v4  ;;  %v855_v14 = vld [vmem:[%s1131_s2 + $0x60] sm:$0xff]  ;;  %610 = vmatmul.msk.bf16.vlgmr.msra.gmra.mxu0 %vm142_vm0, %v892_v12  ;;  %v862_v19 = vld [vmem:[%s1131_s2 + $0x98] sm:$0xff]  ;;  %v853_v22 = vld [vmem:[%s1131_s2 + $0x50] sm:$0xff] }
   0x8   :  { %521 = vmatpush.bf16.msra.mxu3 %v865_v6  ;;  %v863_v15 = vld [vmem:[%s1131_s2 + $0xa0] sm:$0xff]  ;;  %v861_v23 = vld [vmem:[%s1131_s2 + $0x90] sm:$0xff]  ;;  %v870_v24 = vld [vmem:[%s1131_s2 + $0xd8] sm:$0xff] }
   0x9   :  { %v871_v20 = vld [vmem:[%s1131_s2 + $0xe0] sm:$0xff]  ;;  %v844_v25 = vld [vmem:[%s1131_s2 + $0x8] sm:$0xff]  ;;  %v869_v28 = vld [vmem:[%s1131_s2 + $0xd0] sm:$0xff] }
   0xa   :  { %494 = vmatpush.bf16.msra.mxu1 %v848_v8  ;;  %535 = vmatpush.bf16.msrb.mxu0 %v873_v11  ;;  %v852_v26 = vld [vmem:[%s1131_s2 + $0x48] sm:$0xff]  ;;  %v843_v29 = vld [vmem:[%s1131_s2] sm:$0xff]  ;;  %v839_v34 = vld [vmem:[%s1134_s0 + $0x18] sm:$0xf0] }
   0xb   :  { %508 = vmatpush.bf16.msra.mxu2 %v856_v9  ;;  %v860_v27 = vld [vmem:[%s1131_s2 + $0x88] sm:$0xff]  ;;  %v851_v30 = vld [vmem:[%s1131_s2 + $0x40] sm:$0xff]  ;;  %v882_v35 = vld [vmem:[%s1131_s2 + $0x138] sm:$0xff] }
   0xc   :  { %522 = vmatpush.bf16.msra.mxu3 %v864_v10  ;;  %v836_v31 = vld [vmem:[%s1134_s0 + $0x4] sm:$0xf]  ;;  %v615_v32 = vld [vmem:[%s1134_s0 + $0x1c] sm:$0xf0]  ;;  %v890_v36 = vld [vmem:[%s1131_s2 + $0x178] sm:$0xff] }
   0xd   :  { %v613_v33 = vld [vmem:[%s1134_s0] sm:$0xf]  ;;  %v868_v38 = vld [vmem:[%s1131_s2 + $0xc8] sm:$0xff]  ;;  %v618_v39 = vor.u32 %v836_v31, %v615_v32  ;;  %v840_v41 = vld [vmem:[%s1134_s0 + $0x20] sm:$0xf0] }
   0xe   :  { %495 = vmatpush.bf16.msra.mxu1 %v847_v13  ;;  %536 = vmatpush.bf16.msrb.mxu0 %v872_v16  ;;  %v859_v37 = vld [vmem:[%s1131_s2 + $0x80] sm:$0xff]  ;;  %v621_v40 = vld [vmem:[%s1134_s0 + $0x8] sm:$0xf]  ;;  %v614_v42 = vor.u32 %v839_v34, %v613_v33  ;;  %v881_v44 = vld [vmem:[%s1131_s2 + $0x130] sm:$0xff] }
   0xf   :  { %509 = vmatpush.bf16.msra.mxu2 %v855_v14  ;;  %v891_v43 = vld [vmem:[%s1131_s2 + $0x180] sm:$0xff]  ;;  %v889_v45 = vld [vmem:[%s1131_s2 + $0x170] sm:$0xff]  ;;  %v622_v46 = vor.u32 %v840_v41, %v621_v40  ;;  %v837_v48 = vld [vmem:[%s1134_s0 + $0xc] sm:$0xf] }
  0x10   :  { %523 = vmatpush.bf16.msra.mxu3 %v863_v15  ;;  %v867_v47 = vld [vmem:[%s1131_s2 + $0xc0] sm:$0xff]  ;;  %v623_v49 = vld [vmem:[%s1134_s0 + $0x24] sm:$0xf0]  ;;  %v878_v55 = vld [vmem:[%s1131_s2 + $0x118] sm:$0xff] }
  0x11   :  { %v880_v50 = vld [vmem:[%s1131_s2 + $0x128] sm:$0xff]  ;;  %v626_v52 = vor.u32 %v837_v48, %v623_v49  ;;  %v879_v53 = vld [vmem:[%s1131_s2 + $0x120] sm:$0xff]  ;;  %v886_v56 = vld [vmem:[%s1131_s2 + $0x158] sm:$0xff] }
  0x12   :  { %496 = vmatpush.bf16.msra.mxu1 %v846_v17  ;;  %537 = vmatpush.bf16.msrb.mxu0 %v871_v20  ;;  %v888_v51 = vld [vmem:[%s1131_s2 + $0x168] sm:$0xff]  ;;  %v887_v54 = vld [vmem:[%s1131_s2 + $0x160] sm:$0xff]  ;;  %v637_v57 = vld [vmem:[%s1134_s0 + $0x18] sm:$0xf] }
  0x13   :  { %510 = vmatpush.bf16.msra.mxu2 %v854_v18  ;;  %v842_v58 = vld [vmem:[%s1134_s0 + $0x30] sm:$0xf0]  ;;  %v876_v62 = vld [vmem:[%s1131_s2 + $0x108] sm:$0xff]  ;;  %v875_v0 = vld [vmem:[%s1131_s2 + $0x100] sm:$0xff] }
  0x14   :  { %524 = vmatpush.bf16.msra.mxu3 %v862_v19  ;;  %v877_v59 = vld [vmem:[%s1131_s2 + $0x110] sm:$0xff]  ;;  %v638_v61 = vor.u32 %v842_v58, %v637_v57  ;;  %v884_v63 = vld [vmem:[%s1131_s2 + $0x148] sm:$0xff]  ;;  %v883_v1 = vld [vmem:[%s1131_s2 + $0x140] sm:$0xff] }
  0x15   :  { %v885_v60 = vld [vmem:[%s1131_s2 + $0x150] sm:$0xff]  ;;  %v841_v3 = vld [vmem:[%s1134_s0 + $0x28] sm:$0xf0] }
  0x16   :  { %497 = vmatpush.bf16.msra.mxu1 %v845_v21  ;;  %538 = vmatpush.bf16.msrb.mxu0 %v870_v24  ;;  %v629_v2 = vld [vmem:[%s1134_s0 + $0x10] sm:$0xf]  ;;  %v838_v4 = vld [vmem:[%s1134_s0 + $0x14] sm:$0xf] }
  0x17   :  { %511 = vmatpush.bf16.msra.mxu2 %v853_v22  ;;  %v631_v5 = vld [vmem:[%s1134_s0 + $0x2c] sm:$0xf0]  ;;  %v630_v6 = vor.u32 %v841_v3, %v629_v2 }
  0x18   :  { %525 = vmatpush.bf16.msra.mxu3 %v861_v23  ;;  %v634_v7 = vor.u32 %v838_v4, %v631_v5 }
  0x1a   :  { %498 = vmatpush.bf16.msra.mxu1 %v844_v25  ;;  %539 = vmatpush.bf16.msrb.mxu0 %v869_v28 }
  0x1b   :  { %512 = vmatpush.bf16.msra.mxu2 %v852_v26 }
  0x1c   :  { %526 = vmatpush.bf16.msra.mxu3 %v860_v27 }
  0x1e   :  { %499 = vmatpush.bf16.msra.mxu1 %v843_v29  ;;  %540 = vmatpush.bf16.msrb.mxu0 %v868_v38  ;;  %v894_v29 = vld [vmem:[%s1135_s4] ss:$0 sm:$0xff] }
  0x1f   :  { %513 = vmatpush.bf16.msra.mxu2 %v851_v30 }
  0x20   :  { %527 = vmatpush.bf16.msra.mxu3 %v859_v37 }
  0x21   :  { %500 = vmatmul.bf16.vlgmr.msra.gmra.mxu1 %v614_v42 }
  0x22   :  { %548 = vmatpush.bf16.msrb.mxu1 %v882_v35  ;;  %514 = vmatmul.bf16.vlgmr.msra.gmra.mxu2 %v618_v39 }
  0x23   :  { %562 = vmatpush.bf16.msrb.mxu2 %v890_v36  ;;  %528 = vmatmul.bf16.vlgmr.msra.gmra.mxu3 %v622_v46 }
  0x24   :  { %583 = vmatpush.bf16.msrb.mxu3 %v891_v43  ;;  %541 = vmatpush.bf16.msrb.mxu0 %v867_v47 }
  0x26   :  { %549 = vmatpush.bf16.msrb.mxu1 %v881_v44 }
  0x27   :  { %563 = vmatpush.bf16.msrb.mxu2 %v889_v45  ;;  %542 = vmatmul.bf16.vlgmr.msrb.gmra.mxu0 %v626_v52 }
  0x2a   :  { %550 = vmatpush.bf16.msrb.mxu1 %v880_v50 }
  0x2b   :  { %564 = vmatpush.bf16.msrb.mxu2 %v888_v51 }
  0x2e   :  { %551 = vmatpush.bf16.msrb.mxu1 %v879_v53 }
  0x2f   :  { %565 = vmatpush.bf16.msrb.mxu2 %v887_v54 }
  0x32   :  { %552 = vmatpush.bf16.msrb.mxu1 %v878_v55 }
  0x33   :  { %566 = vmatpush.bf16.msrb.mxu2 %v886_v56  ;;  %835 = vmatmul.msk.bf16.vlgmr.msrb.gmra.mxu3 %vm142_vm0, %v638_v61 }
  0x36   :  { %553 = vmatpush.bf16.msrb.mxu1 %v877_v59 }
  0x37   :  { %567 = vmatpush.bf16.msrb.mxu2 %v885_v60 }
  0x3a   :  { %554 = vmatpush.bf16.msrb.mxu1 %v876_v62 }
  0x3b   :  { %568 = vmatpush.bf16.msrb.mxu2 %v884_v63 }
  0x3e   :  { %555 = vmatpush.bf16.msrb.mxu1 %v875_v0 }
  0x3f   :  { %569 = vmatpush.bf16.msrb.mxu2 %v883_v1 }
  0x41   :  { %556 = vmatmul.bf16.vlgmr.msrb.gmra.mxu1 %v630_v6 }
  0x42   :  { %570 = vmatmul.bf16.vlgmr.msrb.gmra.mxu2 %v634_v7 }
  0x84   :  { %v155_v8 = vpop.f32.mrf.mxu0 }
  0x8c   :  { %v157_v10 = vpop.f32.mrf.mxu0 }
  0x9e   :  { %v501_v9 = vpop.f32.mrf.mxu1 }
  0x9f   :  { %v502_v13 = vadd.f32 %v501_v9, %v155_v8 }
  0xa4   :  { %v543_v16 = vpop.f32.mrf.mxu0 }
  0xa5   :  { %v515_v11 = vpop.f32.mrf.mxu2 }
  0xa6   :  { %v529_v12 = vpop.f32.mrf.mxu3  ;;  %v503_v14 = vpop.f32.mrf.mxu1  ;;  %v516_v15 = vadd.f32 %v515_v11, %v502_v13 }
  0xa7   :  { %v504_v20 = vadd.f32 %v503_v14, %v157_v10 }
  0xa8   :  { %v530_v19 = vadd.f32 %v529_v12, %v516_v15 }
  0xaa   :  { %v544_v22 = vadd.f32 %v543_v16, %v530_v19 }
  0xac   :  { %v545_v30 = vpop.f32.mrf.mxu0 }
  0xad   :  { %v517_v17 = vpop.f32.mrf.mxu2 }
  0xae   :  { %v531_v18 = vpop.f32.mrf.mxu3  ;;  %v518_v23 = vadd.f32 %v517_v17, %v504_v20 }
  0xb0   :  { %v532_v27 = vadd.f32 %v531_v18, %v518_v23 }
  0xb2   :  { %v546_v33 = vadd.f32 %v545_v30, %v532_v27 }
  0xb6   :  { %v585_v25 = vpop.f32.mrf.mxu3 }
  0xbe   :  { %v557_v21 = vpop.f32.mrf.mxu1  ;;  %v587_v38 = vpop.f32.mrf.mxu3 }
  0xbf   :  { %v558_v24 = vadd.f32 %v557_v21, %v544_v22 }
  0xc5   :  { %v571_v26 = vpop.f32.mrf.mxu2 }
  0xc6   :  { %v572_v28 = vadd.f32 %v571_v26, %v558_v24  ;;  %v559_v32 = vpop.f32.mrf.mxu1 }
  0xc7   :  { %v560_v35 = vadd.f32 %v559_v32, %v546_v33 }
  0xc8   :  { %v586_v31 = vadd.f32 %v585_v25, %v572_v28 }
  0xca   :  { %v594_v34 = vadd.f32 %v894_v29, %v586_v31 }
  0xcc   :  { %596 = vst [vmem:[%s1136_s5] sm:$0xff] %v594_v34 }
  0xcd   :  { %v573_v36 = vpop.f32.mrf.mxu2 }
  0xce   :  { %v574_v37 = vadd.f32 %v573_v36, %v560_v35 }
  0xd0   :  { %v588_v39 = vadd.f32 %v587_v38, %v574_v37 }
  0xd2   :  { %v595_v40 = vadd.f32 %v894_v29, %v588_v39 }
  0xd4   :  { %597 = vst [vmem:[%s1136_s5 + $0x8] sm:$0xff] %v595_v40 }

</bundles_post_ra>
